<compile_context>
chip_gen: v5e
topology: v5e:2x2
jax: 0.10.0
libtpu: 0.0.40
codegen_flags: <defaults>
</compile_context>

<pallas_src>
import functools

import jax
import jax.numpy as jnp
from jax.experimental import pallas as pl
from jax.experimental.pallas import tpu as pltpu

ALPHA = 0.05
DEGREE = 4

# lane-aligned padded dims
F_MOL_PAD = 128    # 78  -> 128
F_PRO_PAD = 128    # 54 / 108 -> 128
D_MOL_PAD = 128    # 7*16 = 112 -> 128
D_PRO_PAD = 256    # 9*16 = 144 -> 256
OUT_PAD = 128      # n_output = 1 -> 128 (lane-dense output slab)


# ----------------------------------------------------------------------------
# Kernel 1: molecule label propagation, adjacency streamed in row tiles.
# grid = (DEGREE hops, row tiles);  emb accumulates in the resident output.
# ----------------------------------------------------------------------------
def _mol_prop_kernel(adj_ref, x_ref, emb_ref, x_cur, x_next, *, tm, alpha, scale):
    p = pl.program_id(0)          # hop index
    t = pl.program_id(1)          # row-tile index
    row0 = pl.multiple_of(t * tm, tm)

    @pl.when(jnp.logical_and(p == 0, t == 0))
    def _():
        x_cur[...] = x_ref[...]                    # x^(0)
        emb_ref[...] = alpha * x_ref[...]          # emb = alpha * x0

    @pl.when(jnp.logical_and(p > 0, t == 0))
    def _():
        x_cur[...] = x_next[...]                   # promote previous hop

    # rows [row0, row0+tm) of x^(p+1) = A x^(p)
    xn = jnp.dot(adj_ref[...], x_cur[...].astype(jnp.bfloat16),
                 preferred_element_type=jnp.float32)
    x_next[pl.ds(row0, tm), :] = xn
    emb_ref[pl.ds(row0, tm), :] = emb_ref[pl.ds(row0, tm), :] + scale * xn


# ----------------------------------------------------------------------------
# Kernel 2: protein branch, two SAGEConv (mean aggr) layers, adjacency
# streamed in row tiles.  grid = (2 layers, row tiles).
# lin_l / lin_r kept separate -> two accumulating matmuls, no concat.
# ----------------------------------------------------------------------------
def _pro_sage_kernel(adj_ref, x_ref, wl_ref, wr_ref, b_ref, o_ref, x_cur, *, tm):
    p = pl.program_id(0)          # layer index (0 or 1)
    t = pl.program_id(1)          # row-tile index
    row0 = pl.multiple_of(t * tm, tm)
    bf16, f32 = jnp.bfloat16, jnp.float32

    @pl.when(jnp.logical_and(p == 0, t == 0))
    def _():
        x_cur[...] = x_ref[...]                    # layer-1 input

    @pl.when(jnp.logical_and(p > 0, t == 0))
    def _():
        x_cur[...] = o_ref[...]                    # layer-2 input = layer-1 output

    agg = jnp.dot(adj_ref[...], x_cur[...].astype(bf16),
                  preferred_element_type=f32)                  # (tm, F)
    xr = x_cur[pl.ds(row0, tm), :]                             # root features
    h = (jnp.dot(agg.astype(bf16), wl_ref[0], preferred_element_type=f32)
         + jnp.dot(xr.astype(bf16), wr_ref[0], preferred_element_type=f32)
         + b_ref[0])
    o_ref[pl.ds(row0, tm), :] = jnp.maximum(h, 0.0)


# ----------------------------------------------------------------------------
# Kernel 3: pooled heads (mean-pool + branch MLPs + fc1/fc2/out), grid=(1,).
# fc1 weight pre-split per branch -> no in-kernel concatenate.
# ----------------------------------------------------------------------------
def _head_kernel(pool_m_ref, emb_ref, pool_p_ref, xt_ref,
                 mg1_ref, mg2_ref, pg1_ref, pg2_ref,
                 f1m_ref, f1p_ref, f2_ref, ow_ref, bias_ref, o_ref):
    f32, bf16 = jnp.float32, jnp.bfloat16

    def mm(a, b):
        return jnp.dot(a.astype(bf16), b.astype(bf16), preferred_element_type=f32)

    bias = bias_ref[...]                                       # (8, 1024) f32

    # molecule branch head
    xg = mm(pool_m_ref[...], emb_ref[...])                     # (B, 128)
    h = jnp.maximum(mm(xg, mg1_ref[...]) + bias[0:1, :256], 0.0)
    x_mol = mm(h, mg2_ref[...]) + bias[1:2, :D_MOL_PAD]        # (B, 128)

    # protein branch head
    xtg = mm(pool_p_ref[...], xt_ref[...])                     # (B, 128)
    ht = jnp.maximum(mm(xtg, pg1_ref[...]) + bias[2:3, :256], 0.0)
    x_pro = mm(ht, pg2_ref[...]) + bias[3:4, :D_PRO_PAD]       # (B, 256)

    # fused head (fc1 split per branch, relu, fc2, relu, out)
    h1 = jnp.maximum(mm(x_mol, f1m_ref[...]) + mm(x_pro, f1p_ref[...])
                     + bias[4:5, :1024], 0.0)
    h2 = jnp.maximum(mm(h1, f2_ref[...]) + bias[5:6, :512], 0.0)
    o_ref[...] = (mm(h2, ow_ref[...]) + bias[6:7, :OUT_PAD]).astype(o_ref.dtype)


def _full_spec(shape):
    zeros = (0,) * len(shape)
    return pl.BlockSpec(shape, lambda i: zeros)


def _clamp_vmem(nbytes):
    # explicit scoped-VMEM request: 2x headroom, floor 16 MiB, cap 48 MiB
    # (safe on v5e/v6e 128 MiB and v7x 64 MiB physical).
    return int(min(max(2 * nbytes, 16 << 20), 48 << 20))


# ----------------------------------------------------------------------------
# Plain-JAX glue (graph structure -> padded dense matrices)
# ----------------------------------------------------------------------------
def _pad2d(a, rows, cols):
    return jnp.zeros((rows, cols), a.dtype).at[:a.shape[0], :a.shape[1]].set(a)


def _pad1d(a, n):
    return jnp.zeros((n,), a.dtype).at[:a.shape[0]].set(a)


def build_dense_adj(edge_index, n_pad):
    row, col = edge_index
    adj = jnp.zeros((n_pad, n_pad), jnp.float32)
    return adj.at[row, col].add(1.0)


def build_mean_agg(edge_index, n_pad):
    # mean aggregation matrix: M[i, j] = 1/in_deg(i) for edge j -> i
    src, dst = edge_index
    adj = jnp.zeros((n_pad, n_pad), jnp.float32)
    adj = adj.at[dst, src].add(1.0)
    deg = jnp.maximum(adj.sum(axis=1, keepdims=True), 1.0)
    return adj / deg


def build_mean_pool(batch, num_graphs, n_nodes, n_pad):
    onehot = (batch[None, :] == jnp.arange(num_graphs)[:, None]).astype(jnp.float32)
    counts = jnp.maximum(onehot.sum(axis=1, keepdims=True), 1.0)
    pool = onehot / counts
    return jnp.zeros((num_graphs, n_pad), jnp.float32).at[:, :n_nodes].set(pool)


# ----------------------------------------------------------------------------
# GNNNet forward (inference)
# ----------------------------------------------------------------------------
def gnn_forward(params, mol_x, mol_edge_index, mol_batch,
                pro_x, pro_edge_index, pro_batch, num_graphs, *, row_tile=None):
    f32, bf16 = jnp.float32, jnp.bfloat16
    B = num_graphs
    n_mol = mol_x.shape[0]
    n_pro = pro_x.shape[0]

    # row tile for adjacency streaming (multiple of 8; 256 at realistic sizes)
    rt_m = row_tile or (8 if n_mol <= 1024 else 256)
    rt_p = row_tile or (8 if n_pro <= 1024 else 256)
    n_mol_pad = -(-n_mol // rt_m) * rt_m
    n_pro_pad = -(-n_pro // rt_p) * rt_p

    # graph-structure matrices (padded; adjacency streamed as bf16 row tiles)
    adj_mol = build_dense_adj(mol_edge_index, n_mol_pad).astype(bf16)
    adj_pro = build_mean_agg(pro_edge_index, n_pro_pad).astype(bf16)
    pool_mol = build_mean_pool(mol_batch, B, n_mol, n_mol_pad).astype(bf16)
    pool_pro = build_mean_pool(pro_batch, B, n_pro, n_pro_pad).astype(bf16)
    mol_x_p = _pad2d(mol_x.astype(f32), n_mol_pad, F_MOL_PAD)
    pro_x_p = _pad2d(pro_x.astype(f32), n_pro_pad, F_PRO_PAD)

    # SAGE weights: lin_l (aggregated neighbors, has bias) / lin_r (root),
    # zero-padded to (128, 128) and stacked per layer (selected by phase).
    sage_wl = jnp.stack([_pad2d(params["pro_conv1_wl"], F_PRO_PAD, F_PRO_PAD),
                         _pad2d(params["pro_conv2_wl"], F_PRO_PAD, F_PRO_PAD)]).astype(bf16)
    sage_wr = jnp.stack([_pad2d(params["pro_conv1_wr"], F_PRO_PAD, F_PRO_PAD),
                         _pad2d(params["pro_conv2_wr"], F_PRO_PAD, F_PRO_PAD)]).astype(bf16)
    sage_b = jnp.stack([_pad1d(params["pro_conv1_b"], F_PRO_PAD)[None, :],
                        _pad1d(params["pro_conv2_b"], F_PRO_PAD)[None, :]]).astype(f32)

    # head weights, zero-padded to lane-aligned shapes
    mg1 = _pad2d(params["mol_fc_g1_w"], F_MOL_PAD, 256).astype(bf16)
    mg2 = _pad2d(params["mol_fc_g2_w"], 256, D_MOL_PAD).astype(bf16)
    pg1 = _pad2d(params["pro_fc_g1_w"], F_PRO_PAD, 256).astype(bf16)
    pg2 = _pad2d(params["pro_fc_g2_w"], 256, D_PRO_PAD).astype(bf16)
    d_mol = params["mol_fc_g2_w"].shape[1]          # 112
    f1m = _pad2d(params["fc1_w"][:d_mol], D_MOL_PAD, 1024).astype(bf16)
    f1p = _pad2d(params["fc1_w"][d_mol:], D_PRO_PAD, 1024).astype(bf16)
    f2 = params["fc2_w"].astype(bf16)
    ow = _pad2d(params["out_w"], 512, OUT_PAD).astype(bf16)

    # all head biases packed into one f32 slab (one DMA, sliced in-kernel)
    bias_slab = jnp.stack([
        _pad1d(params["mol_fc_g1_b"], 1024),        # row 0: mol_fc_g1 (256)
        _pad1d(params["mol_fc_g2_b"], 1024),        # row 1: mol_fc_g2 (112)
        _pad1d(params["pro_fc_g1_b"], 1024),        # row 2: pro_fc_g1 (256)
        _pad1d(params["pro_fc_g2_b"], 1024),        # row 3: pro_fc_g2 (144)
        _pad1d(params["fc1_b"], 1024),              # row 4: fc1 (1024)
        _pad1d(params["fc2_b"], 1024),              # row 5: fc2 (512)
        _pad1d(params["out_b"], 1024),              # row 6: out (n_output)
        jnp.zeros((1024,), f32),                    # row 7: pad
    ]).astype(f32)

    # ---------------- kernel 1: mol label propagation ----------------
    mol_vmem = _clamp_vmem(2 * rt_m * n_mol_pad * 2 + 6 * n_mol_pad * F_MOL_PAD * 4)
    emb = pl.pallas_call(
        functools.partial(_mol_prop_kernel, tm=rt_m, alpha=ALPHA,
                          scale=(1.0 - ALPHA) / DEGREE),
        out_shape=jax.ShapeDtypeStruct((n_mol_pad, F_MOL_PAD), f32),
        grid_spec=pltpu.PrefetchScalarGridSpec(
            num_scalar_prefetch=0,
            grid=(DEGREE, n_mol_pad // rt_m),
            in_specs=[
                pl.BlockSpec((rt_m, n_mol_pad), lambda p, t: (t, 0)),      # adj rows
                pl.BlockSpec((n_mol_pad, F_MOL_PAD), lambda p, t: (0, 0)),  # x resident
            ],
            out_specs=pl.BlockSpec((n_mol_pad, F_MOL_PAD), lambda p, t: (0, 0)),
            scratch_shapes=[pltpu.VMEM((n_mol_pad, F_MOL_PAD), f32),        # x_cur
                            pltpu.VMEM((n_mol_pad, F_MOL_PAD), f32)],       # x_next
        ),
        compiler_params=pltpu.CompilerParams(
            dimension_semantics=("arbitrary", "arbitrary"),
            vmem_limit_bytes=mol_vmem),
        cost_estimate=pl.CostEstimate(
            flops=int(2 * DEGREE * n_mol_pad * n_mol_pad * F_MOL_PAD),
            transcendentals=0,
            bytes_accessed=int(DEGREE * n_mol_pad * n_mol_pad * 2
                               + 3 * n_mol_pad * F_MOL_PAD * 4)),
    )(adj_mol, mol_x_p)

    # ---------------- kernel 2: protein SAGEConv x2 ----------------
    pro_vmem = _clamp_vmem(2 * rt_p * n_pro_pad * 2 + 5 * n_pro_pad * F_PRO_PAD * 4
                           + 4 * F_PRO_PAD * F_PRO_PAD * 2)
    xt = pl.pallas_call(
        functools.partial(_pro_sage_kernel, tm=rt_p),
        out_shape=jax.ShapeDtypeStruct((n_pro_pad, F_PRO_PAD), f32),
        grid_spec=pltpu.PrefetchScalarGridSpec(
            num_scalar_prefetch=0,
            grid=(2, n_pro_pad // rt_p),
            in_specs=[
                pl.BlockSpec((rt_p, n_pro_pad), lambda p, t: (t, 0)),       # mean-agg rows
                pl.BlockSpec((n_pro_pad, F_PRO_PAD), lambda p, t: (0, 0)),  # x resident
                pl.BlockSpec((1, F_PRO_PAD, F_PRO_PAD), lambda p, t: (p, 0, 0)),  # w_l
                pl.BlockSpec((1, F_PRO_PAD, F_PRO_PAD), lambda p, t: (p, 0, 0)),  # w_r
                pl.BlockSpec((1, 1, F_PRO_PAD), lambda p, t: (p, 0, 0)),          # bias
            ],
            out_specs=pl.BlockSpec((n_pro_pad, F_PRO_PAD), lambda p, t: (0, 0)),
            scratch_shapes=[pltpu.VMEM((n_pro_pad, F_PRO_PAD), f32)],
        ),
        compiler_params=pltpu.CompilerParams(
            dimension_semantics=("arbitrary", "arbitrary"),
            vmem_limit_bytes=pro_vmem),
        cost_estimate=pl.CostEstimate(
            flops=int(2 * (2 * n_pro_pad * n_pro_pad * F_PRO_PAD
                           + 4 * n_pro_pad * F_PRO_PAD * F_PRO_PAD)),
            transcendentals=0,
            bytes_accessed=int(2 * n_pro_pad * n_pro_pad * 2
                               + 3 * n_pro_pad * F_PRO_PAD * 4)),
    )(adj_pro, pro_x_p, sage_wl, sage_wr, sage_b)

    # ---------------- kernel 3: pooled heads + fc1/fc2/out ----------------
    head_args = (pool_mol, emb, pool_pro, xt,
                 mg1, mg2, pg1, pg2, f1m, f1p, f2, ow, bias_slab)
    head_bytes = sum(int(a.size) * a.dtype.itemsize for a in head_args) + B * OUT_PAD * 4
    head_flops = int(2 * B * (n_mol_pad * F_MOL_PAD + F_MOL_PAD * 256 + 256 * D_MOL_PAD
                              + n_pro_pad * F_PRO_PAD + F_PRO_PAD * 256 + 256 * D_PRO_PAD
                              + D_MOL_PAD * 1024 + D_PRO_PAD * 1024 + 1024 * 512
                              + 512 * OUT_PAD))
    out_padded = pl.pallas_call(
        _head_kernel,
        out_shape=jax.ShapeDtypeStruct((B, OUT_PAD), f32),
        grid_spec=pltpu.PrefetchScalarGridSpec(
            num_scalar_prefetch=0,
            grid=(1,),
            in_specs=[_full_spec(a.shape) for a in head_args],
            out_specs=_full_spec((B, OUT_PAD)),
        ),
        compiler_params=pltpu.CompilerParams(
            dimension_semantics=("arbitrary",),
            vmem_limit_bytes=_clamp_vmem(2 * head_bytes)),
        cost_estimate=pl.CostEstimate(flops=head_flops, transcendentals=0,
                                      bytes_accessed=int(head_bytes)),
    )(*head_args)

    n_out = params["out_w"].shape[1]
    return out_padded[:, :n_out]                               # (B, n_output)


# ----------------------------------------------------------------------------
# Deterministic parameter init (shapes from GNNNet.__init__)
# ----------------------------------------------------------------------------
def init_params(key, num_features_pro=54, num_features_mol=78, output_dim=16, n_output=1):
    def lin(k, fan_in, fan_out):
        kw, kb = jax.random.split(k)
        w = jax.random.normal(kw, (fan_in, fan_out), jnp.float32) * 0.05
        b = jax.random.normal(kb, (fan_out,), jnp.float32) * 0.05
        return w, b

    keys = jax.random.split(key, 12)
    p = {}
    p["mol_fc_g1_w"], p["mol_fc_g1_b"] = lin(keys[0], num_features_mol, 256)
    p["mol_fc_g2_w"], p["mol_fc_g2_b"] = lin(keys[1], 256, 7 * output_dim)
    # SAGEConv: lin_l (bias) on aggregated neighbors, lin_r (no bias) on root
    p["pro_conv1_wl"], p["pro_conv1_b"] = lin(keys[2], num_features_pro, num_features_pro)
    p["pro_conv1_wr"], _ = lin(keys[3], num_features_pro, num_features_pro)
    p["pro_conv2_wl"], p["pro_conv2_b"] = lin(keys[4], num_features_pro, num_features_pro * 2)
    p["pro_conv2_wr"], _ = lin(keys[5], num_features_pro, num_features_pro * 2)
    p["pro_fc_g1_w"], p["pro_fc_g1_b"] = lin(keys[6], num_features_pro * 2, 256)
    p["pro_fc_g2_w"], p["pro_fc_g2_b"] = lin(keys[7], 256, 9 * output_dim)
    p["fc1_w"], p["fc1_b"] = lin(keys[8], 16 * output_dim, 1024)
    p["fc2_w"], p["fc2_b"] = lin(keys[9], 1024, 512)
    p["out_w"], p["out_b"] = lin(keys[10], 512, n_output)
    return p


def ring_edges(num_nodes, graph_size):
    # bidirectional ring inside each graph (keeps all node indices present)
    src, dst = [], []
    for start in range(0, num_nodes, graph_size):
        for k in range(graph_size):
            a = start + k
            b = start + (k + 1) % graph_size
            src += [a, b]
            dst += [b, a]
    return jnp.array([src, dst], dtype=jnp.int32)


if __name__ == "__main__":
    key = jax.random.PRNGKey(0)
    k_par, k_mol, k_pro = jax.random.split(key, 3)

    num_graphs = 2            # small demo batch; design is B-agnostic
    n_mol_nodes, f_mol = 16, 78
    n_pro_nodes, f_pro = 16, 54

    params = init_params(k_par)

    mol_x = jax.random.normal(k_mol, (n_mol_nodes, f_mol), jnp.float32)
    pro_x = jax.random.normal(k_pro, (n_pro_nodes, f_pro), jnp.float32)

    mol_edge_index = ring_edges(n_mol_nodes, n_mol_nodes // num_graphs)
    pro_edge_index = ring_edges(n_pro_nodes, n_pro_nodes // num_graphs)

    mol_batch = jnp.repeat(jnp.arange(num_graphs), n_mol_nodes // num_graphs)
    pro_batch = jnp.repeat(jnp.arange(num_graphs), n_pro_nodes // num_graphs)

    # row_tile=8 -> 2 row tiles per node-stage kernel, exercising the tiled path
    out = gnn_forward(params, mol_x, mol_edge_index, mol_batch,
                      pro_x, pro_edge_index, pro_batch, num_graphs, row_tile=8)
    out = jax.block_until_ready(out)

    assert out.shape == (num_graphs, 1), out.shape
    print("KERNEL_OK")
</pallas_src>

<mosaic_0001>
module attributes {stable_mosaic.version = 11 : i64} {
  func.func @_mol_prop_kernel(%arg0: i32, %arg1: i32, %arg2: memref<8x16xbf16, #tpu.memory_space<vmem>>, %arg3: memref<16x128xf32, #tpu.memory_space<vmem>>, %arg4: memref<16x128xf32, #tpu.memory_space<vmem>>, %arg5: memref<16x128xf32, #tpu.memory_space<vmem>>, %arg6: memref<16x128xf32, #tpu.memory_space<vmem>>) attributes {dimension_semantics = [#tpu.dimension_semantics<arbitrary>, #tpu.dimension_semantics<arbitrary>], iteration_bounds = array<i64: 4, 2>, scalar_prefetch = 0 : i64, scratch_operands = 2 : i64, tpu.core_type = #tpu.core_type<tc>, window_params = [{transform_indices = @transform_0, window_bounds = array<i64: 8, 16>}, {pipeline_mode = #tpu.pipeline_mode<synchronous>, transform_indices = @transform_1, window_bounds = array<i64: 16, 128>}, {pipeline_mode = #tpu.pipeline_mode<synchronous>, transform_indices = @transform_2, window_bounds = array<i64: 16, 128>}]} {
    %c8_i32 = arith.constant 8 : i32
    %0 = arith.muli %arg1, %c8_i32 : i32
    %1 = tpu.assume_multiple %0, 8 : i32
    %c0_i32 = arith.constant 0 : i32
    %2 = arith.cmpi eq, %arg0, %c0_i32 : i32
    %c0_i32_0 = arith.constant 0 : i32
    %3 = arith.cmpi eq, %arg1, %c0_i32_0 : i32
    %4 = arith.andi %2, %3 : i1
    %5 = arith.extui %4 : i1 to i32
    %c0_i32_1 = arith.constant 0 : i32
    %6 = arith.cmpi ne, %5, %c0_i32_1 : i32
    scf.if %6 {
      %c0_12 = arith.constant 0 : index
      %c0_13 = arith.constant 0 : index
      %25 = vector.load %arg3[%c0_12, %c0_13] : memref<16x128xf32, #tpu.memory_space<vmem>>, vector<16x128xf32>
      %c0_14 = arith.constant 0 : index
      %c0_15 = arith.constant 0 : index
      %26 = vector.load %arg5[%c0_14, %c0_15] : memref<16x128xf32, #tpu.memory_space<vmem>>, vector<16x128xf32>
      tpu.vector_store %arg5[%c0_14, %c0_15], %25 {strides = array<i32>} : memref<16x128xf32, #tpu.memory_space<vmem>>, vector<16x128xf32>,
      %c0_16 = arith.constant 0 : index
      %c0_17 = arith.constant 0 : index
      %27 = vector.load %arg3[%c0_16, %c0_17] : memref<16x128xf32, #tpu.memory_space<vmem>>, vector<16x128xf32>
      %cst_18 = arith.constant 5.000000e-02 : f32
      %28 = vector.broadcast %cst_18 : f32 to vector<16x128xf32>
      %29 = arith.mulf %28, %27 : vector<16x128xf32>
      %c0_19 = arith.constant 0 : index
      %c0_20 = arith.constant 0 : index
      %30 = vector.load %arg4[%c0_19, %c0_20] : memref<16x128xf32, #tpu.memory_space<vmem>>, vector<16x128xf32>
      tpu.vector_store %arg4[%c0_19, %c0_20], %29 {strides = array<i32>} : memref<16x128xf32, #tpu.memory_space<vmem>>, vector<16x128xf32>,
    } else {
    }
    %c0_i32_2 = arith.constant 0 : i32
    %7 = arith.cmpi sgt, %arg0, %c0_i32_2 : i32
    %c0_i32_3 = arith.constant 0 : i32
    %8 = arith.cmpi eq, %arg1, %c0_i32_3 : i32
    %9 = arith.andi %7, %8 : i1
    %10 = arith.extui %9 : i1 to i32
    %c0_i32_4 = arith.constant 0 : i32
    %11 = arith.cmpi ne, %10, %c0_i32_4 : i32
    scf.if %11 {
      %c0_12 = arith.constant 0 : index
      %c0_13 = arith.constant 0 : index
      %25 = vector.load %arg6[%c0_12, %c0_13] : memref<16x128xf32, #tpu.memory_space<vmem>>, vector<16x128xf32>
      %c0_14 = arith.constant 0 : index
      %c0_15 = arith.constant 0 : index
      %26 = vector.load %arg5[%c0_14, %c0_15] : memref<16x128xf32, #tpu.memory_space<vmem>>, vector<16x128xf32>
      tpu.vector_store %arg5[%c0_14, %c0_15], %25 {strides = array<i32>} : memref<16x128xf32, #tpu.memory_space<vmem>>, vector<16x128xf32>,
    } else {
    }
    %c0 = arith.constant 0 : index
    %c0_5 = arith.constant 0 : index
    %12 = vector.load %arg2[%c0, %c0_5] : memref<8x16xbf16, #tpu.memory_space<vmem>>, vector<8x16xbf16>
    %c0_6 = arith.constant 0 : index
    %c0_7 = arith.constant 0 : index
    %13 = vector.load %arg5[%c0_6, %c0_7] : memref<16x128xf32, #tpu.memory_space<vmem>>, vector<16x128xf32>
    %14 = arith.truncf %13 : vector<16x128xf32> to vector<16x128xbf16>
    %cst = arith.constant dense<0.000000e+00> : vector<8x128xf32>
    %15 = tpu.matmul %12, %14, %cst {dimension_numbers = #tpu.dot_dimension_numbers<[1], [0], [0], [1], [0, 0, 1, 1], [], []>} : vector<8x16xbf16>, vector<16x128xbf16>, vector<8x128xf32> -> vector<8x128xf32>
    %16 = arith.index_cast %1 : i32 to index
    %c0_8 = arith.constant 0 : index
    %17 = vector.load %arg6[%16, %c0_8] : memref<16x128xf32, #tpu.memory_space<vmem>>, vector<8x128xf32>
    tpu.vector_store %arg6[%16, %c0_8], %15 {strides = array<i32>} : memref<16x128xf32, #tpu.memory_space<vmem>>, vector<8x128xf32>,
    %18 = arith.index_cast %1 : i32 to index
    %c0_9 = arith.constant 0 : index
    %19 = vector.load %arg4[%18, %c0_9] : memref<16x128xf32, #tpu.memory_space<vmem>>, vector<8x128xf32>
    %cst_10 = arith.constant 2.375000e-01 : f32
    %20 = vector.broadcast %cst_10 : f32 to vector<8x128xf32>
    %21 = arith.mulf %20, %15 : vector<8x128xf32>
    %22 = arith.addf %19, %21 : vector<8x128xf32>
    %23 = arith.index_cast %1 : i32 to index
    %c0_11 = arith.constant 0 : index
    %24 = vector.load %arg4[%23, %c0_11] : memref<16x128xf32, #tpu.memory_space<vmem>>, vector<8x128xf32>
    tpu.vector_store %arg4[%23, %c0_11], %22 {strides = array<i32>} : memref<16x128xf32, #tpu.memory_space<vmem>>, vector<8x128xf32>,
    return
  }
  func.func @transform_0(%arg0: i32, %arg1: i32) -> (i32, i32) {
    %c0_i32 = arith.constant 0 : i32
    %c0_i32_0 = arith.constant 0 : i32
    return %arg1, %c0_i32 : i32, i32
  }
  func.func @transform_1(%arg0: i32, %arg1: i32) -> (i32, i32) {
    %c0_i32 = arith.constant 0 : i32
    %c0_i32_0 = arith.constant 0 : i32
    %c0_i32_1 = arith.constant 0 : i32
    return %c0_i32, %c0_i32_0 : i32, i32
  }
  func.func @transform_2(%arg0: i32, %arg1: i32) -> (i32, i32) {
    %c0_i32 = arith.constant 0 : i32
    %c0_i32_0 = arith.constant 0 : i32
    %c0_i32_1 = arith.constant 0 : i32
    return %c0_i32, %c0_i32_0 : i32, i32
  }
}

</mosaic_0001>

<bundles_post_ra>
// kernel: tpu_custom_call.1
= control target key start
LH: loop header
LB: loop body
LE: loop exit
PB: predicated region body
PF: predicated region fallthrough
CT: control target
= control target key end

     0   :  { %7 = vsyncpa [#allocation5], 0  ;;  %s760_s0 = inlined_call_operand.hbm [shape: bf16[16,16], index: 0, kind: input, shape index: {}]   ;;  %s761_s1 = inlined_call_operand.hbm [shape: f32[16,128], index: 1, kind: input, shape index: {}]   ;;  %s762_s2 = inlined_call_operand.hbm [shape: f32[16,128], index: 2, kind: output, shape index: {}]  }
   0x1   :  { %9 = vsyncpa [#allocation5 + $0x1], 0 }
   0x2   :  { %10 = vsyncpa [#allocation8], 0 }
   0x3   :  { %11 = vsyncpa [#allocation6], 0  ;;  %s613_s9 = smov 0   ;;  %s615_s10 = smov 0  }
   0x4   :  { %s617_s11 = smov 0   ;;  %s619_s12 = smov 0  }
   0x5   :  { %s621_s13 = smov 0   ;;  %s623_s14 = smov 0  }
   0x6   :  { %s625_s15 = smov 0   ;;  %s627_s16 = smov 0  }
   0x7 LB: > { %s320_s17 = sadd.s32 4294967295, %s590_s16   ;;  %p321_p0 = scmp.ge.s32.totalorder %s590_s16, 1  ;;  %s590_s16 = sphi %s627_s16, %s17_s16   ;;  %s586_s15 = sphi %s625_s15, %s772_s15   ;;  %s582_s14 = sphi %s623_s14, %s771_s14   ;;  %s578_s13 = sphi %s621_s13, %s770_s13   ;;  %s574_s12 = sphi %s619_s12, %s769_s12   ;;  %s570_s11 = sphi %s617_s11, %s768_s11   ;;  %s566_s10 = sphi %s615_s10, %s767_s10   ;;  %s562_s9 = sphi %s613_s9, %s766_s9  }
   0x8   : > { %p657_p1 = scmp.eq.s32.totalorder %s320_s17, 0  ;;  %p102_p2 = scmp.lt.s32.totalorder %s590_s16, 9 }
   0x9   : > { %s113_s21 = sshll.u32 %s761_s1, 4  ;;  %s592_s23 = smov [#allocation7]   ;;  %s114_s21 = int_to_ptr.hbm [resolvable:$true] %s113_s21 }
   0xa   : > { %p665_p3 = pnand %p321_p0, %p102_p2  ;;  %s115_s24 = sshll.u32 %s592_s23, 4  ;;  %s116_s24 = int_to_ptr.vmem [resolvable:$true] %s115_s24 }
   0xb   : > { %s593_s25 = smov 128   ;;  %s594_s26 = smov 8  }
   0xc   : > { %p345_p4 = pneg %p665_p3  ;;  %s26_s27 = sadd.s32 1, %s582_s14 }
   0xd   : > { %p27_p6 = scmp.ge.s32.totalorder %s26_s27, 2  ;;  %s29_s28 = sadd.s32 1, %s586_s15 }
   0xe   : > { %p346_p5 = pnand %p345_p4, %p657_p1  ;;  %s36_s29 = sadd.s32 1, %s570_s11 }
   0xf   : > { %p43_p7 = scmp.ne.s32.totalorder %s570_s11, %s566_s10  ;;  %s774_s27 = smov (%p27_p6, %s26_s27), 0 }
  0x10   : > { %348 = dma.hbm_to_vmem [thread:$0]  (!%p346_p5), %s114_s21, 256, %s116_s24, [#allocation8], %s593_s25, %s593_s25, %s594_s26  }
  0x11   : > { %s776_s28 = smov (!%p27_p6, %s29_s28), %s586_s15  ;;  %s33_s30 = ssub.s32 %s582_s14, %s774_s27 }
  0x12   : > { %p44_p8 = scmp.eq.s32.totalorder %s590_s16, 0  ;;  %p31_p9 = scmp.ge.s32.totalorder %s776_s28, 4 }
  0x13   : > { %p34_p10 = scmp.eq.s32.totalorder %s33_s30, 0  ;;  %p49_p11 = scmp.ne.s32.totalorder %s566_s10, %s562_s9 }
  0x14   : > { %s778_s28 = smov (%p31_p9, %s776_s28), 0  ;;  %p45_p12 = por %p44_p8, %p43_p7 }
  0x15   : > { %s689_s3 = scalar_select %p34_p10, %s570_s11, %s36_s29  }
  0x16   : > { %p693_p13 = por %p657_p1, %p49_p11  ;;  %s129_s5 = sand.u32 1, %s570_s11  }
  0x17   : > { %s325_s6 = sshll.u32 %s582_s14, 2  ;;  %p354_p0 = scmp.lt.s32.totalorder %s590_s16, 8 }
  0x18   : > { %s324_s7 = sshll.u32 %s129_s5, 2  ;;  %s137_s20 = scalar_lea.hbm %s760_s0, %s325_s6 }
  0x19   : > { %s139_s21 = sshll.u32 %s137_s20, 4  ;;  %s133_s9 = scalar_lea.vmem [#allocation4], %s324_s7  ;;  %s140_s21 = int_to_ptr.hbm [resolvable:$true] %s139_s21 }
  0x1a   : > { %s141_s23 = sshll.u32 %s133_s9, 4  ;;  %p350_p2 = pnand %p354_p0, %p45_p12  ;;  %s142_s23 = int_to_ptr.vmem [resolvable:$true] %s141_s23 }
  0x1b   : > { %s130_s24 = scalar_lea.sflag [#allocation5], %s129_s5  ;;  %150 = sbr.rel (%p665_p3) target bundleno = 210 (0xd2), region = 28 }
  0x1c   : > { %352 = dma.hbm_to_vmem [thread:$0]  (!%p350_p2), %s140_s21, 64, %s142_s23, %s130_s24  }
  0x1d   : > { %s152_s25 = sand.u32 (!%p665_p3), 1, %s566_s10  }
  0x1e   : > { %s706_s26 = sshll.u32 (!%p665_p3), %s152_s25, 2  ;;  %s153_s29 = scalar_lea.sflag (!%p665_p3), [#allocation5], %s152_s25 }
  0x1f   : > { %s156_s30 = scalar_lea.vmem (!%p665_p3), [#allocation4], %s706_s26 }
  0x20   : > { %549 = dma.done.wait (%p693_p13), %s153_s29, 64  }
  0x21   : > { %551 = vsyncadd (%p693_p13), %s153_s29, 4294967232 }
  0x22   : > { %553 = dma.done.wait (%p657_p1), [#allocation8], 256  }
  0x23   : > { %555 = vsyncadd (%p657_p1), [#allocation8], 4294967040  ;;  %s329_s22 = sshll.u32 %s574_s12, 3  ;;  %p180_p3 = scmp.eq.s32.totalorder %s578_s13, 0 }
  0x24   : > { %p181_p4 = scmp.eq.s32.totalorder %s574_s12, 0 }
  0x26   : > { %p182_p5 = pnand %p181_p4, %p180_p3 }
  0x28   : > { %185 = sbr.rel (%p182_p5) target bundleno = 50 (0x32), region = 40 }
  0x2d   : > { %v186_v0 = vld [vmem:[#allocation7] sm:$0xff]  ;;  %v187_v1 = vld [vmem:[#allocation7 + $0x8] sm:$0xff] }
  0x2e   : > { %188 = vst [vmem:[#allocation2] sm:$0xff] %v186_v0  ;;  %v192_v2 = vmul.f32 0.05, %v186_v0  ;;  %v193_v3 = vmul.f32 0.05, %v187_v1 }
  0x2f   : > { %189 = vst [vmem:[#allocation2 + $0x8] sm:$0xff] %v187_v1 }
  0x30   : > { %194 = vst [vmem:[#allocation9] sm:$0xff] %v192_v2 }
  0x31   : > { %195 = vst [vmem:[#allocation9 + $0x8] sm:$0xff] %v193_v3 }
  0x32 PF: > { %p196_p1 = scmp.gt.s32.totalorder %s578_s13, 0 }
  0x34   : > { %p197_p6 = pnand %p196_p1, %p181_p4 }
  0x36   : > { %200 = sbr.rel (%p197_p6) target bundleno = 62 (0x3e), region = 44 }
  0x3b   : > { %v201_v4 = vld [vmem:[#allocation3] sm:$0xff]  ;;  %v202_v5 = vld [vmem:[#allocation3 + $0x8] sm:$0xff] }
  0x3c   : > { %203 = vst [vmem:[#allocation2] sm:$0xff] %v201_v4 }
  0x3d   : > { %204 = vst [vmem:[#allocation2 + $0x8] sm:$0xff] %v202_v5 }
  0x3e PF: > { %v205_v9 = vld [vmem:[%s156_s30] sm:$0xf]  ;;  %vm209_vm0 = vcmask 130048   ;;  %s595_s13 = smov [#allocation9]   ;;  %s240_s6 = sshll.u32 %s762_s2, 4  ;;  %s241_s6 = int_to_ptr.hbm [resolvable:$true] %s240_s6 }
  0x3f   : > { %s238_s18 = sshll.u32 %s595_s13, 4  ;;  %s228_s7 = scalar_lea.vmem [#allocation9], %s329_s22  ;;  %s239_s18 = int_to_ptr.vmem [resolvable:$true] %s238_s18 }
  0x40   : > { %v229_v11 = vld [vmem:[%s228_s7] sm:$0xff]  ;;  %s226_s8 = scalar_lea.vmem [#allocation3], %s329_s22  ;;  %p356_p7 = scmp.eq.s32.totalorder %s320_s17, 7 }
  0x41   : > { %s596_s19 = smov 128   ;;  %s597_s20 = smov 8  }
  0x43   : > { %v206_v6 = vld [vmem:[#allocation2] sm:$0xff] }
  0x44   : > { %v207_v7 = vld [vmem:[#allocation2 + $0x8] sm:$0xff] }
  0x45   : > { %v208_v8 = vpack.c.bf16 %v207_v7, %v206_v6 }
  0x47   : > { %220 = vmatpush.bf16.msra.mxu0 %v208_v8 }
  0x4a   : > { %330 = vmatmul.msk.bf16.vlgmr.msra.gmra.mxu0 %vm209_vm0, %v205_v9 }
  0xc7   : > { %v222_v10 = vpop.f32.mrf.mxu0 }
  0xc8   : > { %227 = vst [vmem:[%s226_s8] sm:$0xff] %v222_v10  ;;  %v230_v12 = vmul.f32 0.2375, %v222_v10 }
  0xca   : > { %v231_v13 = vadd.f32 %v230_v12, %v229_v11 }
  0xcc   : > { %232 = vst [vmem:[%s228_s7] sm:$0xff] %v231_v13 }
  0xcd   : > { %342 = dma.vmem_to_hbm [thread:$0]  (%p356_p7), %s239_s18, 256, %s241_s6, [#allocation6], %s596_s19, %s596_s19, %s597_s20  }
  0xcf   : > { %v224_v14 = vpop.f32.mrf.mxu0 }
  0xd0   : > { %557 = dma.done.wait (%p356_p7), [#allocation6], 256  }
  0xd1   : > { %559 = vsyncadd (%p356_p7), [#allocation6], 4294967040 }
  0xd2 PF: > { %s17_s16 = sadd.s32 1, %s590_s16   ;;  %s766_s9 = smov %s566_s10 }
  0xd3   : > { %p14_p8 = scmp.ge.s32.totalorder %s17_s16, 10   ;;  %s767_s10 = smov %s570_s11 }
  0xd4   : > { %s768_s11 = smov %s689_s3  ;;  %s769_s12 = smov %s582_s14 }
  0xd5   : > { %s770_s13 = smov %s586_s15  ;;  %s771_s14 = smov %s774_s27 }
  0xd6   : > { %s772_s15 = smov %s778_s28  ;;  %16 = sbr.rel (!%p14_p8) target bundleno = 7 (0x7), region = 79 }
  0xdb   :  { %257 = vsyncpa [#allocation5], 1 }
  0xdc   :  { %259 = vsyncpa [#allocation5 + $0x1], 1 }
  0xdd   :  { %260 = vsyncpa [#allocation8], 1 }
  0xde   :  { %261 = vsyncpa [#allocation6], 1 }
  0xdf   :  { %263 = vsyncpa [#allocation6 + $0x1], 1 }

</bundles_post_ra>
